<compile_context>
chip_gen: v7x
topology: tpu7x:2x2x1
jax: 0.10.0
libtpu: 0.0.40
codegen_flags: <defaults>
</compile_context>

<pallas_src>
import functools
import numpy as np
import jax
import jax.numpy as jnp
from jax.experimental import pallas as pl
from jax.experimental.pallas import tpu as pltpu

NEG_SLOPE = 0.01  # nn.LeakyReLU default negative_slope


def _leaky_relu(x):
    return jnp.where(x > 0, x, NEG_SLOPE * x)


def _rup(v, m):
    return (v + m - 1) // m * m


def _device_hints():
    """Fold factor + grid-split hint per TPU generation.

    R*D / R*2mf hit the native MXU fill: 128 on v5e (4x128^2 MXU), 256 on
    v6e/v7x (2x256^2).  Multi-TensorCore chips (v7x, v4/v5p megacore) want the
    1-D "parallel" grid to have >=2 steps so both cores get work.
    """
    R, force_split = 8, False
    try:
        kind = jax.devices()[0].device_kind.lower()
        if "v5e" in kind or "v5 lite" in kind or "v5litepod" in kind:
            R = 4
        if "v7" in kind or "v4" in kind or "v5p" in kind:
            force_split = True
    except Exception:
        pass
    return R, force_split


# ----------------------------------------------------------------------------
# Host-side parameter packing: block-diagonal layer fusion + R-way lane fold.
# ----------------------------------------------------------------------------
def pack_params(params, *, D, mf, nc, no, R, weight_dtype=jnp.bfloat16):
    """Pack the 12 Linear weights into one bf16 slab + one small f32 bias slab.

    Layer fusion (removes x[:, :2]/x[:, 2:] slices and the [c1 | cr] concat):
        W1 = blockdiag(w_c1a[2,mf],  w_lc1[D-2,mf])   [D, 2mf]
        W2 = blockdiag(w_c1b[mf,1],  w_lc2[mf,nc-1])  [2mf, nc]
    R-fold (R edge rows ride in the lane dim): every W -> kron(eye(R), W),
    every bias -> tile(b, R).
    """
    (w_c1a, b_c1a, w_c1b, b_c1b, w_lc1, b_lc1, w_lc2, b_lc2,
     w_xl, b_xl, w_co, b_co) = [np.asarray(p, np.float32) for p in params]
    H2 = 2 * mf

    W1 = np.zeros((D, H2), np.float32)
    W1[:2, :mf] = w_c1a
    W1[2:, mf:] = w_lc1
    W2 = np.zeros((H2, nc), np.float32)
    W2[:mf, :1] = w_c1b
    W2[mf:, 1:] = w_lc2
    b1 = np.concatenate([b_c1a.ravel(), b_lc1.ravel()])
    b2 = np.concatenate([b_c1b.ravel(), b_lc2.ravel()])

    eye = np.eye(R, dtype=np.float32)
    W1f, W2f = np.kron(eye, W1), np.kron(eye, W2)
    Wxlf, Wcof = np.kron(eye, w_xl), np.kron(eye, w_co)
    b1f, b2f = np.tile(b1, R), np.tile(b2, R)
    bxlf, bcof = np.tile(b_xl.ravel(), R), np.tile(b_co.ravel(), R)

    r_w1 = 0
    r_w2 = _rup(r_w1 + R * D, 8)
    r_xl = _rup(r_w2 + R * H2, 8)
    r_co = _rup(r_xl + R * nc, 8)
    rows = _rup(r_co + R * mf, 8)
    cols = _rup(max(R * H2, R * nc, R * mf, R * no), 128)

    wslab = np.zeros((rows, cols), np.float32)
    wslab[r_w1:r_w1 + R * D, :R * H2] = W1f
    wslab[r_w2:r_w2 + R * H2, :R * nc] = W2f
    wslab[r_xl:r_xl + R * nc, :R * mf] = Wxlf
    wslab[r_co:r_co + R * mf, :R * no] = Wcof

    # Biases stay f32 (cheap, avoids silent bf16 bias degradation).
    bslab = np.zeros((8, cols), np.float32)
    bslab[0, :R * H2] = b1f
    bslab[1, :R * nc] = b2f
    bslab[2, :R * mf] = bxlf
    bslab[3, :R * no] = bcof

    return (jnp.asarray(wslab, weight_dtype), jnp.asarray(bslab, jnp.float32),
            (r_w1, r_w2, r_xl, r_co))


# ----------------------------------------------------------------------------
# Kernel
# ----------------------------------------------------------------------------
def _explainer_kernel(x_ref, w_ref, b_ref, out_ref, *, R, D, mf, nc, no, offs):
    H2 = 2 * mf
    Df, H2f, ncf, mff, nof = R * D, R * H2, R * nc, R * mf, R * no
    r_w1, r_w2, r_xl, r_co = offs

    x = x_ref[...]                                               # [TF, R*D] bf16

    # fused + folded layer-1 pair: hh = leaky(x @ kron(I_R, blockdiag(Wc1a,Wlc1)) + b1)
    w1 = w_ref[r_w1:r_w1 + Df, 0:H2f]                            # [R*D, R*2mf] bf16
    b1 = b_ref[0:1, 0:H2f]                                       # [1, R*2mf] f32
    hh = _leaky_relu(jnp.dot(x, w1, preferred_element_type=jnp.float32) + b1)

    # fused + folded layer-2 pair -> concepts (replica-major along lanes)
    w2 = w_ref[r_w2:r_w2 + H2f, 0:ncf]                           # [R*2mf, R*nc]
    b2 = b_ref[1:2, 0:ncf]
    concepts = jnp.dot(hh.astype(jnp.bfloat16), w2,
                       preferred_element_type=jnp.float32) + b2  # [TF, R*nc]

    # concepts2outputs:
    #   XLogic(nc, mf, 'sigmoid')            == sigmoid(x) @ W + b
    #   LeakyReLU ; Linear(mf, no)
    #   XLogic(no, no, 'identity', top=True) == identity passthrough
    # sigmoid via EUP exp + approximate reciprocal (keeps the VALU slot free).
    s = pl.reciprocal(1.0 + jnp.exp(-concepts), approx=True)
    wxl = w_ref[r_xl:r_xl + ncf, 0:mff]
    bxl = b_ref[2:3, 0:mff]
    h3 = _leaky_relu(jnp.dot(s.astype(jnp.bfloat16), wxl,
                             preferred_element_type=jnp.float32) + bxl)
    wco = w_ref[r_co:r_co + mff, 0:nof]
    bco = b_ref[3:4, 0:nof]
    out = jnp.dot(h3.astype(jnp.bfloat16), wco,
                  preferred_element_type=jnp.float32) + bco      # [TF, R*no]

    # Lane-dense transposed writeback: two sublane-sliced stores (no lane concat,
    # no narrow masked vst).  out_ref block is [R*(nc+no), tile_f].
    out_ref[0:ncf, :] = concepts.T.astype(out_ref.dtype)
    out_ref[ncf:ncf + nof, :] = out.T.astype(out_ref.dtype)


# ----------------------------------------------------------------------------
# Wrapper
# ----------------------------------------------------------------------------
def _pick_tiling(E_f, *, tile_f_max=1024, force_split=False, min_split=256):
    """Balanced folded-row tiling. Returns (tile_f, E_f_pad)."""
    split = force_split and E_f >= min_split
    if E_f <= tile_f_max and not split:
        tile_f = max(16, _rup(E_f, 16))      # >=16 sublanes for bf16 x packing
        return tile_f, tile_f
    n_tiles = pl.cdiv(E_f, tile_f_max)
    if split:
        n_tiles = max(2, n_tiles)
    tile_f = _rup(pl.cdiv(E_f, n_tiles), 128)   # 128-multiple lanes for the
    n_tiles = pl.cdiv(E_f, tile_f)              # transposed output block
    return tile_f, n_tiles * tile_f


def explainer_forward(x, wslab, bslab, offs, *, R, mf, n_concepts, n_outputs,
                      tile_f_max=1024, force_split=False):
    """x: [E, D] float32. Returns (outputs [E, n_outputs], concepts [E, n_concepts])."""
    E, D = x.shape
    nc, no = n_concepts, n_outputs
    ncf, nof = R * nc, R * no

    E_f = pl.cdiv(E, R)
    tile_f, E_f_pad = _pick_tiling(E_f, tile_f_max=tile_f_max,
                                   force_split=force_split)
    E_pad = E_f_pad * R

    # bf16 x halves the dominant HBM read; the row fold ([E_pad, D] ->
    # [E_pad/R, R*D]) is a contiguous reshape, i.e. free host-side.
    x_bf = jnp.zeros((E_pad, D), jnp.bfloat16).at[:E].set(x.astype(jnp.bfloat16))
    x_fold = x_bf.reshape(E_f_pad, R * D)

    kernel = functools.partial(_explainer_kernel, R=R, D=D, mf=mf,
                               nc=nc, no=no, offs=offs)

    comb_t = pl.pallas_call(
        kernel,
        out_shape=jax.ShapeDtypeStruct((ncf + nof, E_f_pad), jnp.float32),
        grid_spec=pltpu.PrefetchScalarGridSpec(
            num_scalar_prefetch=0,
            grid=(E_f_pad // tile_f,),
            in_specs=[
                pl.BlockSpec((tile_f, R * D), lambda i: (i, 0)),   # folded x tiles
                pl.BlockSpec(wslab.shape, lambda i: (0, 0)),       # resident weights
                pl.BlockSpec(bslab.shape, lambda i: (0, 0)),       # resident f32 biases
            ],
            out_specs=pl.BlockSpec((ncf + nof, tile_f), lambda i: (0, i)),
        ),
        compiler_params=pltpu.CompilerParams(
            dimension_semantics=("parallel",)),
    )(x_fold, wslab, bslab)

    # Un-transpose / un-fold host-side.  Padded rows E..E_pad carry garbage
    # (zero input * nonzero bias) and are sliced off here; never reduce over
    # the padded output without masking.
    comb = comb_t.T                                   # [E_f_pad, R*(nc+no)]
    concepts = comb[:, :ncf].reshape(E_f_pad * R, nc)[:E]
    outputs = comb[:, ncf:ncf + nof].reshape(E_f_pad * R, no)[:E]
    return outputs, concepts


# ----------------------------------------------------------------------------
# Pure-JAX reference (f32, unfused) for correctness checks.
# ----------------------------------------------------------------------------
def explainer_reference(x, params):
    (w_c1a, b_c1a, w_c1b, b_c1b, w_lc1, b_lc1, w_lc2, b_lc2,
     w_xl, b_xl, w_co, b_co) = params
    lk = _leaky_relu
    c1 = lk(x[:, :2] @ w_c1a + b_c1a) @ w_c1b + b_c1b
    cr = lk(x[:, 2:] @ w_lc1 + b_lc1) @ w_lc2 + b_lc2
    concepts = jnp.concatenate([c1, cr], axis=-1)
    h3 = lk(jax.nn.sigmoid(concepts) @ w_xl + b_xl)
    outputs = h3 @ w_co + b_co
    return outputs, concepts


def init_linear(key, in_dim, out_dim):
    """PyTorch nn.Linear default init; weight stored pre-transposed as [in, out]."""
    k1, k2 = jax.random.split(key)
    bound = 1.0 / np.sqrt(in_dim)
    w = jax.random.uniform(k1, (in_dim, out_dim), jnp.float32, -bound, bound)
    b = jax.random.uniform(k2, (1, out_dim), jnp.float32, -bound, bound)
    return w, b


if __name__ == "__main__":
    key = jax.random.PRNGKey(0)
    keys = jax.random.split(key, 9)

    # module hyper-parameters (no_use_concepts = False path)
    pgn_latent_features = 8
    minfinder_features = 16
    n_concepts = 4
    n_outputs = 2
    D = minfinder_features + 2 * pgn_latent_features  # 32

    # -------- parameters (deterministic, synthetic) --------
    w_c1a, b_c1a = init_linear(keys[0], 2, minfinder_features)               # latent2C1[0]
    w_c1b, b_c1b = init_linear(keys[1], minfinder_features, 1)               # latent2C1[2]
    # TODO(synk): the original module declares latent2concepts[0] with in_features = D,
    # but forward() feeds x[:, 2:] (D-2 features); we size the weight to D-2 so the
    # forward semantics actually run (real checkpoint weights would need rows [2:]).
    w_lc1, b_lc1 = init_linear(keys[2], D - 2, minfinder_features)           # latent2concepts[0]
    w_lc2, b_lc2 = init_linear(keys[3], minfinder_features, n_concepts - 1)  # latent2concepts[2]
    w_xl, b_xl = init_linear(keys[4], n_concepts, minfinder_features)        # XLogic (sigmoid) linear
    w_co, b_co = init_linear(keys[5], minfinder_features, n_outputs)         # Linear(mf, n_outputs)
    params = [w_c1a, b_c1a, w_c1b, b_c1b,
              w_lc1, b_lc1, w_lc2, b_lc2,
              w_xl, b_xl, w_co, b_co]

    R, force_split = _device_hints()
    wslab, bslab, offs = pack_params(params, D=D, mf=minfinder_features,
                                     nc=n_concepts, no=n_outputs, R=R)

    # -------- synthetic graph inputs --------
    N_nodes = 10
    E_total = 12
    latent_pgn = jax.random.normal(keys[6], (N_nodes, pgn_latent_features), jnp.float32)

    edge_index = np.stack([np.arange(E_total) % N_nodes,
                           (np.arange(E_total) * 3 + 1) % N_nodes]).astype(np.int32)
    mask_edge_index = np.zeros(E_total, dtype=bool)
    mask_edge_index[[3, 7, 9, 11]] = True        # drop 4 -> 8 real edges

    M = 12
    latent_minfinder = jax.random.normal(keys[7], (M, minfinder_features), jnp.float32)
    mask_graphs = np.zeros(M, dtype=bool)
    mask_graphs[[0, 5]] = True                   # keep 10 rows
    mask_fake_edges = np.zeros(10, dtype=bool)
    mask_fake_edges[[2, 6]] = True               # keep 8 rows (matches 8 real edges)

    # -------- glue: boolean-mask gather + concat (dynamic shapes -> host-side) --------
    keep_e = np.nonzero(~mask_edge_index)[0]
    src = edge_index[0, keep_e]
    dst = edge_index[1, keep_e]
    latent_pgn_per_edge = jnp.concatenate(
        [latent_pgn[src], latent_pgn[dst]], axis=-1)                     # [E, 2*pgn]
    lm_masked = latent_minfinder[np.nonzero(~mask_graphs)[0]]
    lm_masked = lm_masked[np.nonzero(~mask_fake_edges)[0]]               # [E, mf]
    x = jnp.concatenate([lm_masked, latent_pgn_per_edge], axis=1)        # [E, D]

    # -------- Pallas kernel: the full MLP hot path (tiny-E path) --------
    outputs, concepts = explainer_forward(
        x, wslab, bslab, offs, R=R, mf=minfinder_features,
        n_concepts=n_concepts, n_outputs=n_outputs, force_split=force_split)
    jax.block_until_ready(outputs)
    jax.block_until_ready(concepts)

    out_ref, conc_ref = explainer_reference(x, params)
    assert outputs.shape == (x.shape[0], n_outputs)
    assert concepts.shape == (x.shape[0], n_concepts)
    assert float(jnp.max(jnp.abs(outputs - out_ref))) < 5e-2   # bf16 x/weights tolerance
    assert float(jnp.max(jnp.abs(concepts - conc_ref))) < 5e-2

    # -------- larger batch: exercises the multi-tile / balanced-grid path --------
    E_big = 9000
    x_big = jax.random.normal(keys[8], (E_big, D), jnp.float32)
    out_b, conc_b = explainer_forward(
        x_big, wslab, bslab, offs, R=R, mf=minfinder_features,
        n_concepts=n_concepts, n_outputs=n_outputs, force_split=force_split)
    jax.block_until_ready(out_b)
    jax.block_until_ready(conc_b)
    out_br, conc_br = explainer_reference(x_big, params)
    assert out_b.shape == (E_big, n_outputs) and conc_b.shape == (E_big, n_concepts)
    assert float(jnp.max(jnp.abs(out_b - out_br))) < 5e-2
    assert float(jnp.max(jnp.abs(conc_b - conc_br))) < 5e-2

    print("KERNEL_OK")
</pallas_src>

<mosaic_0001>
module attributes {stable_mosaic.version = 11 : i64} {
  func.func @_explainer_kernel(%arg0: i32, %arg1: memref<16x256xbf16, #tpu.memory_space<vmem>>, %arg2: memref<672x256xbf16, #tpu.memory_space<vmem>>, %arg3: memref<8x256xf32, #tpu.memory_space<vmem>>, %arg4: memref<48x16xf32, #tpu.memory_space<vmem>>) attributes {dimension_semantics = [#tpu.dimension_semantics<parallel>], iteration_bounds = array<i64: 1>, scalar_prefetch = 0 : i64, scratch_operands = 0 : i64, tpu.core_type = #tpu.core_type<tc>, window_params = [{transform_indices = @transform_0, window_bounds = array<i64: 16, 256>}, {pipeline_mode = #tpu.pipeline_mode<synchronous>, transform_indices = @transform_1, window_bounds = array<i64: 672, 256>}, {pipeline_mode = #tpu.pipeline_mode<synchronous>, transform_indices = @transform_2, window_bounds = array<i64: 8, 256>}, {transform_indices = @transform_3, window_bounds = array<i64: 48, 16>}]} {
    %c0 = arith.constant 0 : index
    %c0_0 = arith.constant 0 : index
    %0 = vector.load %arg1[%c0, %c0_0] : memref<16x256xbf16, #tpu.memory_space<vmem>>, vector<16x256xbf16>
    %c0_1 = arith.constant 0 : index
    %c0_2 = arith.constant 0 : index
    %1 = vector.load %arg2[%c0_1, %c0_2] : memref<672x256xbf16, #tpu.memory_space<vmem>>, vector<256x256xbf16>
    %c0_3 = arith.constant 0 : index
    %c0_4 = arith.constant 0 : index
    %2 = vector.load %arg3[%c0_3, %c0_4] : memref<8x256xf32, #tpu.memory_space<vmem>>, vector<1x256xf32>
    %cst = arith.constant dense<0.000000e+00> : vector<16x256xf32>
    %3 = tpu.matmul %0, %1, %cst {dimension_numbers = #tpu.dot_dimension_numbers<[1], [0], [0], [1], [0, 0, 1, 1], [], []>} : vector<16x256xbf16>, vector<256x256xbf16>, vector<16x256xf32> -> vector<16x256xf32>
    %4 = vector.broadcast %2 : vector<1x256xf32> to vector<16x256xf32>
    %5 = arith.addf %3, %4 : vector<16x256xf32>
    %cst_5 = arith.constant 0.000000e+00 : f32
    %6 = vector.broadcast %cst_5 : f32 to vector<16x256xf32>
    %7 = arith.cmpf ogt, %5, %6 : vector<16x256xf32>
    %cst_6 = arith.constant 0.00999999977 : f32
    %8 = vector.broadcast %cst_6 : f32 to vector<16x256xf32>
    %9 = arith.mulf %8, %5 : vector<16x256xf32>
    %10 = arith.select %7, %5, %9 : vector<16x256xi1>, vector<16x256xf32>
    %c256 = arith.constant 256 : index
    %c0_7 = arith.constant 0 : index
    %11 = vector.load %arg2[%c256, %c0_7] : memref<672x256xbf16, #tpu.memory_space<vmem>>, vector<256x32xbf16>
    %c1 = arith.constant 1 : index
    %c0_8 = arith.constant 0 : index
    %12 = vector.load %arg3[%c1, %c0_8] : memref<8x256xf32, #tpu.memory_space<vmem>>, vector<1x32xf32>
    %13 = arith.truncf %10 : vector<16x256xf32> to vector<16x256xbf16>
    %cst_9 = arith.constant dense<0.000000e+00> : vector<16x32xf32>
    %14 = tpu.matmul %13, %11, %cst_9 {dimension_numbers = #tpu.dot_dimension_numbers<[1], [0], [0], [1], [0, 0, 1, 1], [], []>} : vector<16x256xbf16>, vector<256x32xbf16>, vector<16x32xf32> -> vector<16x32xf32>
    %15 = vector.broadcast %12 : vector<1x32xf32> to vector<16x32xf32>
    %16 = arith.addf %14, %15 : vector<16x32xf32>
    %cst_10 = arith.constant 0.000000e+00 : f32
    %17 = vector.broadcast %cst_10 : f32 to vector<16x32xf32>
    %18 = arith.subf %17, %16 : vector<16x32xf32>
    %19 = math.exp %18 : vector<16x32xf32>
    %cst_11 = arith.constant 1.000000e+00 : f32
    %20 = vector.broadcast %cst_11 : f32 to vector<16x32xf32>
    %21 = arith.addf %20, %19 : vector<16x32xf32>
    %22 = tpu.reciprocal %21 {approx = true} : vector<16x32xf32> -> vector<16x32xf32>
    %c512 = arith.constant 512 : index
    %c0_12 = arith.constant 0 : index
    %23 = vector.load %arg2[%c512, %c0_12] : memref<672x256xbf16, #tpu.memory_space<vmem>>, vector<32x128xbf16>
    %c2 = arith.constant 2 : index
    %c0_13 = arith.constant 0 : index
    %24 = vector.load %arg3[%c2, %c0_13] : memref<8x256xf32, #tpu.memory_space<vmem>>, vector<1x128xf32>
    %25 = arith.truncf %22 : vector<16x32xf32> to vector<16x32xbf16>
    %cst_14 = arith.constant dense<0.000000e+00> : vector<16x128xf32>
    %26 = tpu.matmul %25, %23, %cst_14 {dimension_numbers = #tpu.dot_dimension_numbers<[1], [0], [0], [1], [0, 0, 1, 1], [], []>} : vector<16x32xbf16>, vector<32x128xbf16>, vector<16x128xf32> -> vector<16x128xf32>
    %27 = vector.broadcast %24 : vector<1x128xf32> to vector<16x128xf32>
    %28 = arith.addf %26, %27 : vector<16x128xf32>
    %cst_15 = arith.constant 0.000000e+00 : f32
    %29 = vector.broadcast %cst_15 : f32 to vector<16x128xf32>
    %30 = arith.cmpf ogt, %28, %29 : vector<16x128xf32>
    %cst_16 = arith.constant 0.00999999977 : f32
    %31 = vector.broadcast %cst_16 : f32 to vector<16x128xf32>
    %32 = arith.mulf %31, %28 : vector<16x128xf32>
    %33 = arith.select %30, %28, %32 : vector<16x128xi1>, vector<16x128xf32>
    %c544 = arith.constant 544 : index
    %c0_17 = arith.constant 0 : index
    %34 = vector.load %arg2[%c544, %c0_17] : memref<672x256xbf16, #tpu.memory_space<vmem>>, vector<128x16xbf16>
    %c3 = arith.constant 3 : index
    %c0_18 = arith.constant 0 : index
    %35 = vector.load %arg3[%c3, %c0_18] : memref<8x256xf32, #tpu.memory_space<vmem>>, vector<1x16xf32>
    %36 = arith.truncf %33 : vector<16x128xf32> to vector<16x128xbf16>
    %cst_19 = arith.constant dense<0.000000e+00> : vector<16x16xf32>
    %37 = tpu.matmul %36, %34, %cst_19 {dimension_numbers = #tpu.dot_dimension_numbers<[1], [0], [0], [1], [0, 0, 1, 1], [], []>} : vector<16x128xbf16>, vector<128x16xbf16>, vector<16x16xf32> -> vector<16x16xf32>
    %38 = vector.broadcast %35 : vector<1x16xf32> to vector<16x16xf32>
    %39 = arith.addf %37, %38 : vector<16x16xf32>
    %40 = tpu.transpose %16, [1, 0] : vector<16x32xf32> -> vector<32x16xf32>
    %c0_20 = arith.constant 0 : index
    %c0_21 = arith.constant 0 : index
    %41 = vector.load %arg4[%c0_20, %c0_21] : memref<48x16xf32, #tpu.memory_space<vmem>>, vector<32x16xf32>
    tpu.vector_store %arg4[%c0_20, %c0_21], %40 {strides = array<i32>} : memref<48x16xf32, #tpu.memory_space<vmem>>, vector<32x16xf32>,
    %42 = tpu.transpose %39, [1, 0] : vector<16x16xf32> -> vector<16x16xf32>
    %c32 = arith.constant 32 : index
    %c0_22 = arith.constant 0 : index
    %43 = vector.load %arg4[%c32, %c0_22] : memref<48x16xf32, #tpu.memory_space<vmem>>, vector<16x16xf32>
    tpu.vector_store %arg4[%c32, %c0_22], %42 {strides = array<i32>} : memref<48x16xf32, #tpu.memory_space<vmem>>, vector<16x16xf32>,
    return
  }
  func.func @transform_0(%arg0: i32) -> (i32, i32) {
    %c0_i32 = arith.constant 0 : i32
    %c0_i32_0 = arith.constant 0 : i32
    return %arg0, %c0_i32 : i32, i32
  }
  func.func @transform_1(%arg0: i32) -> (i32, i32) {
    %c0_i32 = arith.constant 0 : i32
    %c0_i32_0 = arith.constant 0 : i32
    %c0_i32_1 = arith.constant 0 : i32
    return %c0_i32, %c0_i32_0 : i32, i32
  }
  func.func @transform_2(%arg0: i32) -> (i32, i32) {
    %c0_i32 = arith.constant 0 : i32
    %c0_i32_0 = arith.constant 0 : i32
    %c0_i32_1 = arith.constant 0 : i32
    return %c0_i32, %c0_i32_0 : i32, i32
  }
  func.func @transform_3(%arg0: i32) -> (i32, i32) {
    %c0_i32 = arith.constant 0 : i32
    %c0_i32_0 = arith.constant 0 : i32
    return %c0_i32, %arg0 : i32, i32
  }
}

</mosaic_0001>

<bundles_post_ra>
// kernel: tpu_custom_call.1
= control target key start
LH: loop header
LB: loop body
LE: loop exit
PB: predicated region body
PF: predicated region fallthrough
CT: control target
= control target key end

     0   :  { %8 = vsyncpa [#allocation3], 0  ;;  %s1141_s0 = inlined_call_operand.hbm [shape: bf16[16,256], index: 0, kind: input, shape index: {}]   ;;  %s1142_s1 = inlined_call_operand.hbm [shape: bf16[672,256], index: 1, kind: input, shape index: {}]   ;;  %s1143_s2 = inlined_call_operand.hbm [shape: f32[8,256], index: 2, kind: input, shape index: {}]   ;;  %s1144_s3 = inlined_call_operand.vmem [shape: f32[48,16], index: 3, kind: output, shape index: {}]  }
   0x1   :  { %9 = vsyncpa [#allocation5], 0  ;;  %s1045_s12 = smov [#allocation4]   ;;  %s1046_s14 = smov [#allocation2]  }
   0x2   :  { %s27_s13 = sshll.u32 %s1045_s12, 4  ;;  %s15_s15 = sshll.u32 %s1046_s14, 4  ;;  %s28_s13 = int_to_ptr.vmem [resolvable:$true] %s27_s13  ;;  %s1072_s15 = int_to_ptr.vmem [resolvable:$true] %s15_s15 }
   0x3   :  { %s975_s18 = scalar_lea.hbm %s1142_s1, 10752 }
   0x4   :  { %p976_p0 = scmp.ne.s32.totalorder %s1142_s1, %s975_s18  ;;  %p979_p1 = scmp.lt.u32.totalorder %s975_s18, %s1142_s1 }
   0x6   :  { %p981_p2 = pnand %p979_p1, %p976_p0 }
   0x8   :  { %984 = shalt.err (!%p981_p2)
}
   0x9   :  { %s985_s23 = scalar_lea.vmem %s28_s13, 10752  ;;  %p990_p4 = scmp.lt.s32.totalorder %s28_s13, %s28_s13 }
   0xa   :  { %p986_p3 = scmp.ne.s32.totalorder %s28_s13, %s985_s23  ;;  %p991_p5 = scmp.lt.s32.totalorder %s985_s23, %s985_s23 }
   0xc   :  { %p992_p6 = por %p991_p5, %p990_p4 }
   0xe   :  { %p993_p7 = pnand %p992_p6, %p986_p3 }
  0x10   :  { %996 = shalt.err (!%p993_p7)
}
  0x11   :  { %s1047_s24 = smov 128   ;;  %s1048_s25 = smov 8  }
  0x12   :  { %33 = dma.hbm_to_vmem [thread:$0]  %s1142_s1, 10752, %s28_s13, [#allocation5], %s1047_s24, %s1047_s24, %s1048_s25  }
  0x13   :  { %s997_s30 = scalar_lea.hbm %s1141_s0, 256 }
  0x14   :  { %p998_p8 = scmp.ne.s32.totalorder %s1141_s0, %s997_s30  ;;  %p1001_p9 = scmp.lt.u32.totalorder %s997_s30, %s1141_s0 }
  0x16   :  { %p1003_p10 = pnand %p1001_p9, %p998_p8 }
  0x18   :  { %1006 = shalt.err (!%p1003_p10)
}
  0x19   :  { %s1007_s8 = scalar_lea.vmem %s1072_s15, 256  ;;  %p1012_p12 = scmp.lt.s32.totalorder %s1072_s15, %s1072_s15 }
  0x1a   :  { %p1008_p11 = scmp.ne.s32.totalorder %s1072_s15, %s1007_s8  ;;  %p1013_p13 = scmp.lt.s32.totalorder %s1007_s8, %s1007_s8 }
  0x1c   :  { %p1014_p0 = por %p1013_p13, %p1012_p12 }
  0x1e   :  { %p1015_p1 = pnand %p1014_p0, %p1008_p11 }
  0x20   :  { %1018 = shalt.err (!%p1015_p1)
}
  0x21   :  { %21 = dma.hbm_to_vmem [thread:$0]  %s1141_s0, 256, %s1072_s15, [#allocation3], %s1047_s24, %s1047_s24, %s1048_s25  }
  0x22   :  { %s1049_s10 = smov [#allocation6]   ;;  %s1019_s14 = scalar_lea.hbm %s1143_s2, 256 }
  0x23   :  { %s40_s11 = sshll.u32 %s1049_s10, 4  ;;  %p1020_p2 = scmp.ne.s32.totalorder %s1143_s2, %s1019_s14  ;;  %s41_s11 = int_to_ptr.vmem [resolvable:$true] %s40_s11 }
  0x24   :  { %p1023_p3 = scmp.lt.u32.totalorder %s1019_s14, %s1143_s2 }
  0x26   :  { %p1025_p4 = pnand %p1023_p3, %p1020_p2 }
  0x28   :  { %1028 = shalt.err (!%p1025_p4)
}
  0x29   :  { %s1029_s20 = scalar_lea.vmem %s41_s11, 256  ;;  %p1034_p6 = scmp.lt.s32.totalorder %s41_s11, %s41_s11 }
  0x2a   :  { %p1030_p5 = scmp.ne.s32.totalorder %s41_s11, %s1029_s20  ;;  %p1035_p7 = scmp.lt.s32.totalorder %s1029_s20, %s1029_s20 }
  0x2c   :  { %p1036_p8 = por %p1035_p7, %p1034_p6 }
  0x2e   :  { %p1037_p9 = pnand %p1036_p8, %p1030_p5 }
  0x30   :  { %1040 = shalt.err (!%p1037_p9)
}
  0x31   :  { %43 = dma.hbm_to_vmem [thread:$0]  %s1143_s2, 256, %s41_s11, [#allocation5]  }
  0x32   :  { %1041 = dma.done.wait [#allocation3], 256  }
  0x33   :  { %1042 = vsyncadd [#allocation3], 4294967040 }
  0x34   :  { %1043 = dma.done.wait [#allocation5], 11008  }
  0x35   :  { %1044 = vsyncadd [#allocation5], 4294956288  ;;  %v890_v0 = vld [vmem:[#allocation4 + $0x4] ss:$8 sps:$4 sm:$0xff]   ;;  %v892_v1 = vld [vmem:[#allocation4] ss:$8 sps:$4 sm:$0xff]   ;;  %v90_v50 = vlaneseq }
  0x36   :  { %270 = vmatprep.subr.bf16.mxu0 %v890_v0  ;;  %v893_v2 = vld [vmem:[#allocation4 + $0x14] ss:$8 sps:$4 sm:$0xff]   ;;  %v895_v3 = vld [vmem:[#allocation4 + $0x10] ss:$8 sps:$4 sm:$0xff]   ;;  %v896_v4 = vld [vmem:[#allocation4 + $0x24] ss:$8 sps:$4 sm:$0xff]  }
  0x37   :  { %271 = vmatpush1.bf16.msra.mxu0 %v892_v1  ;;  %v898_v5 = vld [vmem:[#allocation4 + $0x20] ss:$8 sps:$4 sm:$0xff]   ;;  %v899_v6 = vld [vmem:[#allocation4 + $0x34] ss:$8 sps:$4 sm:$0xff]   ;;  %v901_v7 = vld [vmem:[#allocation4 + $0x30] ss:$8 sps:$4 sm:$0xff]  }
  0x38   :  { %272 = vmatprep.subr.bf16.mxu0 %v893_v2  ;;  %v902_v8 = vld [vmem:[#allocation4 + $0x44] ss:$8 sps:$4 sm:$0xff]   ;;  %v904_v9 = vld [vmem:[#allocation4 + $0x40] ss:$8 sps:$4 sm:$0xff]   ;;  %v905_v10 = vld [vmem:[#allocation4 + $0x54] ss:$8 sps:$4 sm:$0xff]  }
  0x39   :  { %v907_v11 = vld [vmem:[#allocation4 + $0x50] ss:$8 sps:$4 sm:$0xff]   ;;  %v908_v12 = vld [vmem:[#allocation4 + $0x64] ss:$8 sps:$4 sm:$0xff]   ;;  %v910_v13 = vld [vmem:[#allocation4 + $0x60] ss:$8 sps:$4 sm:$0xff]  }
  0x3a   :  { %v911_v14 = vld [vmem:[#allocation4 + $0x74] ss:$8 sps:$4 sm:$0xff]   ;;  %v941_v16 = vld [vmem:[#allocation4 + $0x180] ss:$8 sps:$4 sm:$0xff]   ;;  %v913_v18 = vld [vmem:[#allocation4 + $0x70] ss:$8 sps:$4 sm:$0xff]  }
  0x3b   :  { %273 = vmatpush1.bf16.msra.mxu0 %v895_v3  ;;  %v940_v15 = vld [vmem:[#allocation2 + $0x4] ss:$8 sps:$4 sm:$0xff]   ;;  %v942_v17 = vld [vmem:[#allocation4 + $0x100] ss:$8 sps:$4 sm:$0xff]   ;;  %821 = vmatprep.subr.bf16.mxu1 %v941_v16  ;;  %v943_v19 = vld [vmem:[#allocation4 + $0x190] ss:$8 sps:$4 sm:$0xff]  }
  0x3c   :  { %274 = vmatprep.subr.bf16.mxu0 %v896_v4  ;;  %302 = vmatprep.mubr.bf16.mxu0 %v940_v15  ;;  %v944_v20 = vld [vmem:[#allocation4 + $0x110] ss:$8 sps:$4 sm:$0xff]   ;;  %v945_v21 = vld [vmem:[#allocation4 + $0x1a0] ss:$8 sps:$4 sm:$0xff]   ;;  %v914_v22 = vld [vmem:[#allocation4 + $0x84] ss:$8 sps:$4 sm:$0xff]  }
  0x3d   :  { %822 = vmatpush3.bf16.msra.mxu1 %v942_v17  ;;  %v916_v23 = vld [vmem:[#allocation4 + $0x80] ss:$8 sps:$4 sm:$0xff]   ;;  %v947_v25 = vld [vmem:[#allocation4 + $0x1b0] ss:$8 sps:$4 sm:$0xff]   ;;  %v917_v26 = vld [vmem:[#allocation4 + $0x94] ss:$8 sps:$4 sm:$0xff]  }
  0x3e   :  { %823 = vmatprep.subr.bf16.mxu1 %v943_v19  ;;  %v946_v24 = vld [vmem:[#allocation4 + $0x120] ss:$8 sps:$4 sm:$0xff]   ;;  %v919_v27 = vld [vmem:[#allocation4 + $0x90] ss:$8 sps:$4 sm:$0xff]   ;;  %v920_v30 = vld [vmem:[#allocation4 + $0xa4] ss:$8 sps:$4 sm:$0xff]  }
  0x3f   :  { %275 = vmatpush1.bf16.msra.mxu0 %v898_v5  ;;  %v948_v28 = vld [vmem:[#allocation4 + $0x130] ss:$8 sps:$4 sm:$0xff]   ;;  %v949_v29 = vld [vmem:[#allocation4 + $0x1c0] ss:$8 sps:$4 sm:$0xff]   ;;  %v923_v33 = vld [vmem:[#allocation4 + $0xb4] ss:$8 sps:$4 sm:$0xff]  }
  0x40   :  { %276 = vmatprep.subr.bf16.mxu0 %v899_v6  ;;  %v950_v31 = vld [vmem:[#allocation4 + $0x140] ss:$8 sps:$4 sm:$0xff]   ;;  %v925_v34 = vld [vmem:[#allocation4 + $0xb0] ss:$8 sps:$4 sm:$0xff]   ;;  %v926_v35 = vld [vmem:[#allocation4 + $0xc4] ss:$8 sps:$4 sm:$0xff]  }
  0x41   :  { %824 = vmatpush3.bf16.msra.mxu1 %v944_v20  ;;  %v922_v32 = vld [vmem:[#allocation4 + $0xa0] ss:$8 sps:$4 sm:$0xff]   ;;  %v929_v37 = vld [vmem:[#allocation4 + $0xd4] ss:$8 sps:$4 sm:$0xff]   ;;  %v931_v38 = vld [vmem:[#allocation4 + $0xd0] ss:$8 sps:$4 sm:$0xff]  }
  0x42   :  { %825 = vmatprep.subr.bf16.mxu1 %v945_v21  ;;  %v928_v36 = vld [vmem:[#allocation4 + $0xc0] ss:$8 sps:$4 sm:$0xff]   ;;  %v932_v39 = vld [vmem:[#allocation4 + $0xe4] ss:$8 sps:$4 sm:$0xff]   ;;  %v935_v41 = vld [vmem:[#allocation4 + $0xf4] ss:$8 sps:$4 sm:$0xff]  }
  0x43   :  { %277 = vmatpush1.bf16.msra.mxu0 %v901_v7  ;;  %v934_v40 = vld [vmem:[#allocation4 + $0xe0] ss:$8 sps:$4 sm:$0xff]   ;;  %v937_v42 = vld [vmem:[#allocation4 + $0xf0] ss:$8 sps:$4 sm:$0xff]   ;;  %v91_v51 = vshrl.u32 %v90_v50, 7  ;;  %vm1051_vm4 = vmmov 0  }
  0x44   :  { %278 = vmatprep.subr.bf16.mxu0 %v902_v8  ;;  %v938_v43 = vld [vmem:[#allocation2] ss:$8 sps:$4 sm:$0xff]   ;;  %v953_v46 = vld [vmem:[#allocation4 + $0x1e0] ss:$8 sps:$4 sm:$0xff]   ;;  %vm525_vm5 = vcmask 261120   ;;  %vm715_vm8 = vcmask 130048  }
  0x45   :  { %826 = vmatpush3.bf16.msra.mxu1 %v946_v24  ;;  %v951_v44 = vld [vmem:[#allocation4 + $0x1d0] ss:$8 sps:$4 sm:$0xff]   ;;  %v954_v47 = vld [vmem:[#allocation4 + $0x160] ss:$8 sps:$4 sm:$0xff]   ;;  %v92_v52 = vsub.s32 0, %v91_v51  ;;  %v96_v54 = vsub.s32 1, %v91_v51 }
  0x46   :  { %827 = vmatprep.subr.bf16.mxu1 %v947_v25  ;;  %v952_v45 = vld [vmem:[#allocation4 + $0x150] ss:$8 sps:$4 sm:$0xff]   ;;  %v88_v53 = vld [vmem:[#allocation6] ss:$8 sm:$0x3] }
  0x47   :  { %279 = vmatpush1.bf16.msra.mxu0 %v904_v9  ;;  %v955_v48 = vld [vmem:[#allocation4 + $0x1f0] ss:$8 sps:$4 sm:$0xff]   ;;  %v93_v55 = vrot.slane %v88_v53, %v92_v52  ;;  %v97_v56 = vrot.slane %v88_v53, %v96_v54  ;;  %v357_v16 = vld [vmem:[#allocation6 + $0x1] ss:$0 sm:$0xff] }
  0x48   :  { %280 = vmatprep.subr.bf16.mxu0 %v905_v10  ;;  %v956_v49 = vld [vmem:[#allocation4 + $0x170] ss:$8 sps:$4 sm:$0xff]  }
  0x49   :  { %828 = vmatpush3.bf16.msra.mxu1 %v948_v28 }
  0x4a   :  { %829 = vmatprep.subr.bf16.mxu1 %v949_v29 }
  0x4b   :  { %281 = vmatpush1.bf16.msra.mxu0 %v907_v11  ;;  %v957_v11 = vld [vmem:[#allocation4 + $0x200] ss:$8 sps:$4 sm:$0xff]  }
  0x4c   :  { %282 = vmatprep.subr.bf16.mxu0 %v908_v12  ;;  %v1050_v12 = vmov 0.0  }
  0x4d   :  { %830 = vmatpush3.bf16.msra.mxu1 %v950_v31 }
  0x4e   :  { %831 = vmatprep.subr.bf16.mxu1 %v951_v44 }
  0x4f   :  { %283 = vmatpush1.bf16.msra.mxu0 %v910_v13  ;;  %v958_v13 = vld [vmem:[#allocation4 + $0x210] ss:$8 sps:$4 sm:$0xff]  }
  0x50   :  { %284 = vmatprep.subr.bf16.mxu0 %v911_v14 }
  0x51   :  { %832 = vmatpush3.bf16.msra.mxu1 %v952_v45 }
  0x52   :  { %833 = vmatprep.subr.bf16.mxu1 %v953_v46 }
  0x53   :  { %285 = vmatpush1.bf16.msra.mxu0 %v913_v18 }
  0x54   :  { %286 = vmatprep.subr.bf16.mxu0 %v914_v22 }
  0x55   :  { %834 = vmatpush3.bf16.msra.mxu1 %v954_v47 }
  0x56   :  { %835 = vmatprep.subr.bf16.mxu1 %v955_v48 }
  0x57   :  { %287 = vmatpush1.bf16.msra.mxu0 %v916_v23 }
  0x58   :  { %288 = vmatprep.subr.bf16.mxu0 %v917_v26 }
  0x59   :  { %836 = vmatpush3.bf16.msra.mxu1 %v956_v49 }
  0x5a   :  { %855 = vmatprep.subr.bf16.mxu1 %v1050_v12 }
  0x5b   :  { %289 = vmatpush1.bf16.msra.mxu0 %v919_v27 }
  0x5c   :  { %290 = vmatprep.subr.bf16.mxu0 %v920_v30 }
  0x5f   :  { %291 = vmatpush1.bf16.msra.mxu0 %v922_v32 }
  0x60   :  { %292 = vmatprep.subr.bf16.mxu0 %v923_v33  ;;  %v959_v33 = vld [vmem:[#allocation4 + $0x220] ss:$8 sps:$4 sm:$0xff]  }
  0x63   :  { %293 = vmatpush1.bf16.msra.mxu0 %v925_v34 }
  0x64   :  { %294 = vmatprep.subr.bf16.mxu0 %v926_v35  ;;  %v960_v35 = vld [vmem:[#allocation4 + $0x230] ss:$8 sps:$4 sm:$0xff]  }
  0x67   :  { %295 = vmatpush1.bf16.msra.mxu0 %v928_v36  ;;  %v961_v36 = vld [vmem:[#allocation4 + $0x240] ss:$8 sps:$4 sm:$0xff]  }
  0x68   :  { %296 = vmatprep.subr.bf16.mxu0 %v929_v37  ;;  %v962_v37 = vld [vmem:[#allocation4 + $0x250] ss:$8 sps:$4 sm:$0xff]  }
  0x6b   :  { %297 = vmatpush1.bf16.msra.mxu0 %v931_v38  ;;  %v963_v38 = vld [vmem:[#allocation4 + $0x260] ss:$8 sps:$4 sm:$0xff]  }
  0x6c   :  { %298 = vmatprep.subr.bf16.mxu0 %v932_v39  ;;  %v964_v39 = vld [vmem:[#allocation4 + $0x270] ss:$8 sps:$4 sm:$0xff]  }
  0x6f   :  { %299 = vmatpush1.bf16.msra.mxu0 %v934_v40  ;;  %v965_v40 = vld [vmem:[#allocation4 + $0x280] ss:$8 sps:$4 sm:$0xff]  }
  0x70   :  { %300 = vmatprep.subr.bf16.mxu0 %v935_v41  ;;  %v966_v41 = vld [vmem:[#allocation4 + $0x290] ss:$8 sps:$4 sm:$0xff]  }
  0x73   :  { %301 = vmatpush1.bf16.msra.mxu0 %v937_v42  ;;  %v511_v42 = vld [vmem:[#allocation6 + $0x2] ss:$0 sm:$0xff] }
  0x76   :  { %303 = vmatmul.mubr.bf16.vlgmr.msra.gmra.mrb[0].mxu0 %v938_v43 }
 0x149   :  { %v304_v57 = vpop.f32.mrb[0].mxu0 }
 0x14a   :  { %v305_v58 = vadd.f32 %v304_v57, %v93_v55  ;;  %v306_v59 = vpop.f32.mrb[1].mxu0  ;;  %v592_v57 = vld [vmem:[#allocation6 + $0x3] ss:$0 sm:$0xff] }
 0x14b   :  { %v307_v60 = vadd.f32 %v306_v59, %v97_v56  ;;  %v308_v61 = vpop.f32.mrb[2].mxu0 }
 0x14c   :  { %v317_v62 = vmul.f32 0.01, %v305_v58  ;;  %v309_v63 = vadd.f32 %v308_v61, %v93_v55  ;;  %v310_v0 = vpop.f32.mrb[3].mxu0  ;;  %vm313_vm0 = vcmp.gt.f32.partialorder %v305_v58, 0.0 }
 0x14d   :  { %v318_v1 = vmul.f32 0.01, %v307_v60  ;;  %v311_v2 = vadd.f32 %v310_v0, %v97_v56  ;;  %vm314_vm2 = vcmp.gt.f32.partialorder %v307_v60, 0.0 }
 0x14e   :  { %vm315_vm1 = vcmp.gt.f32.partialorder %v309_v63, 0.0  ;;  %v319_v3 = vmul.f32 0.01, %v309_v63  ;;  %v321_v5 = vsel %vm313_vm0, %v305_v58, %v317_v62 }
 0x14f   :  { %v320_v4 = vmul.f32 0.01, %v311_v2  ;;  %vm316_vm3 = vcmp.gt.f32.partialorder %v311_v2, 0.0  ;;  %v322_v7 = vsel %vm314_vm2, %v307_v60, %v318_v1 }
 0x150   :  { %v323_v6 = vsel %vm315_vm1, %v309_v63, %v319_v3 }
 0x151   :  { %v324_v8 = vsel %vm316_vm3, %v311_v2, %v320_v4  ;;  %v358_v9 = vpack.c.bf16 %v323_v6, %v321_v5 }
 0x152   :  { %v359_v10 = vpack.c.bf16 %v324_v8, %v322_v7 }
 0x154   :  { %488 = vmatprep.mubr.bf16.mxu1 %v359_v10 }
 0x155   :  { %489 = vmatmul.mubr.bf16.vlgmr.msra.gmra.mrb[0].mxu1 %v358_v9 }
 0x156   :  { %859 = vmatprep.mubr.msk.bf16.mxu1 %vm1051_vm4, %v1050_v12  ;;  %856 = vmatpush3.bf16.msra.mxu1 %v957_v11 }
 0x157   :  { %857 = vmatprep.subr.bf16.mxu1 %v1050_v12 }
 0x15a   :  { %858 = vmatpush3.bf16.msra.mxu1 %v958_v13 }
 0x15b   :  { %863 = vmatprep.subr.bf16.mxu1 %v1050_v12 }
 0x228   :  { %v837_v14 = vpop.f32.mrb[0].mxu1 }
 0x229   :  { %v838_v15 = vpop.f32.mrb[1].mxu1 }
 0x22a   :  { %v839_v17 = vadd.f32 %v838_v15, %v837_v14  ;;  %v840_v18 = vpop.f32.mrb[2].mxu1 }
 0x22b   :  { %v841_v19 = vpop.f32.mrb[3].mxu1 }
 0x22c   :  { %v842_v20 = vadd.f32 %v841_v19, %v840_v18  ;;  %v491_v21 = vadd.f32 %v839_v17, %v357_v16 }
 0x22e   :  { %683 = vxpose.xlu0.b32.start [1/2] (short) (narrow) %v491_v21, 32  ;;  %v497_v22 = vsub.f32 0.0, %v491_v21  ;;  %v494_v23 = vadd.f32 %v842_v20, %v357_v16 }
 0x230   :  { %v499_v24 = vmul.f32 1.442695, %v497_v22  ;;  %v498_v25 = vsub.f32 0.0, %v494_v23 }
 0x232   :  { %967 = vpow2.f32 %v499_v24  ;;  %v501_v26 = vmul.f32 1.442695, %v498_v25  ;;  %684 = vxpose.xlu0.b32.end [2/2] (short) (narrow) %v494_v23, 32 }
 0x234   :  { %969 = vpow2.f32 %v501_v26 }
 0x23c   :  { %v968_v27 = vpop.eup %967 }
 0x23d   :  { %v503_v28 = vadd.f32 1.0, %v968_v27 }
 0x23e   :  { %v970_v29 = vpop.eup %969 }
 0x23f   :  { %v504_v30 = vadd.f32 1.0, %v970_v29  ;;  %971 = vrcp.f32 %v503_v28 }
 0x241   :  { %973 = vrcp.f32 %v504_v30 }
 0x249   :  { %v972_v31 = vpop.eup %971 }
 0x24b   :  { %v974_v32 = vpop.eup %973 }
 0x24c   :  { %v512_v34 = vpack.c.bf16 %v974_v32, %v972_v31 }
 0x24e   :  { %860 = vmatmul.mubr.msk.bf16.vlgmr.msra.gmra.mrb[4].mxu1 %vm525_vm5, %v512_v34 }
 0x24f   :  { %864 = vmatpush3.bf16.msra.mxu1 %v959_v33  ;;  %879 = vmatprep.mubr.msk.bf16.mxu1 %vm1051_vm4, %v1050_v12 }
 0x250   :  { %865 = vmatprep.subr.bf16.mxu1 %v1050_v12 }
 0x253   :  { %866 = vmatpush3.bf16.msra.mxu1 %v960_v35 }
 0x254   :  { %867 = vmatprep.subr.bf16.mxu1 %v1050_v12 }
 0x257   :  { %868 = vmatpush3.bf16.msra.mxu1 %v961_v36 }
 0x258   :  { %869 = vmatprep.subr.bf16.mxu1 %v1050_v12 }
 0x25b   :  { %870 = vmatpush3.bf16.msra.mxu1 %v962_v37 }
 0x25c   :  { %871 = vmatprep.subr.bf16.mxu1 %v1050_v12 }
 0x25f   :  { %872 = vmatpush3.bf16.msra.mxu1 %v963_v38 }
 0x260   :  { %873 = vmatprep.subr.bf16.mxu1 %v1050_v12 }
 0x263   :  { %874 = vmatpush3.bf16.msra.mxu1 %v964_v39 }
 0x264   :  { %875 = vmatprep.subr.bf16.mxu1 %v1050_v12 }
 0x267   :  { %876 = vmatpush3.bf16.msra.mxu1 %v965_v40 }
 0x268   :  { %877 = vmatprep.subr.bf16.mxu1 %v1050_v12 }
 0x26b   :  { %878 = vmatpush3.bf16.msra.mxu1 %v966_v41 }
 0x2ae   :  { %v699_v54 = vpop.trf.xlu0 }
 0x2af   :  { %716 = vst.msk [vmem:[%s1144_s3] sm:$0xff] %vm715_vm8, %v699_v54 }
 0x2b2   :  { %v700_v55 = vpop.trf.xlu0 }
 0x2b3   :  { %717 = vst.msk [vmem:[%s1144_s3 + $0x8] sm:$0xff] %vm715_vm8, %v700_v55 }
 0x2b6   :  { %v701_v56 = vpop.trf.xlu0 }
 0x2b7   :  { %718 = vst.msk [vmem:[%s1144_s3 + $0x10] sm:$0xff] %vm715_vm8, %v701_v56 }
 0x2ba   :  { %v702_v63 = vpop.trf.xlu0 }
 0x2bb   :  { %719 = vst.msk [vmem:[%s1144_s3 + $0x18] sm:$0xff] %vm715_vm8, %v702_v63 }
 0x321   :  { %v563_v43 = vpop.f32.mrb[4].mxu1 }
 0x322   :  { %v564_v44 = vadd.f32 %v563_v43, %v511_v42  ;;  %v861_v45 = vpop.f32.mrb[5].mxu1 }
 0x323   :  { %v566_v46 = vpop.f32.mrb[6].mxu1 }
 0x324   :  { %v572_v47 = vmul.f32 0.01, %v564_v44  ;;  %v567_v48 = vadd.f32 %v566_v46, %v511_v42  ;;  %v862_v49 = vpop.f32.mrb[7].mxu1  ;;  %vm570_vm6 = vcmp.gt.f32.partialorder %v564_v44, 0.0 }
 0x326   :  { %vm571_vm7 = vcmp.gt.f32.partialorder %v567_v48, 0.0  ;;  %v573_v50 = vmul.f32 0.01, %v567_v48  ;;  %v574_v51 = vsel %vm570_vm6, %v564_v44, %v572_v47 }
 0x328   :  { %v575_v52 = vsel %vm571_vm7, %v567_v48, %v573_v50 }
 0x329   :  { %v593_v53 = vpack.c.bf16 %v575_v52, %v574_v51 }
 0x32b   :  { %880 = vmatmul.mubr.bf16.vlgmr.msra.gmra.mrb[8].mxu1 %v593_v53 }
 0x3fe   :  { %v676_v58 = vpop.f32.mrb[8].mxu1 }
 0x3ff   :  { %v881_v59 = vpop.f32.mrb[9].mxu1  ;;  %v677_v60 = vadd.f32 %v676_v58, %v592_v57 }
 0x400   :  { %v679_v61 = vpop.f32.mrb[10].mxu1 }
 0x401   :  { %720 = vxpose.xlu1.b32.start [1/2] (short) (narrow) %v677_v60, 16  ;;  %v882_v62 = vpop.f32.mrb[11].mxu1  ;;  %v680_v0 = vadd.f32 %v679_v61, %v592_v57 }
 0x405   :  { %721 = vxpose.xlu1.b32.end [2/2] (short) (narrow) %v680_v0, 16 }
 0x481   :  { %v736_v1 = vpop.trf.xlu1 }
 0x482   :  { %752 = vst.msk [vmem:[%s1144_s3 + $0x20] sm:$0xff] %vm715_vm8, %v736_v1 }
 0x485   :  { %v737_v2 = vpop.trf.xlu1 }
 0x486   :  { %753 = vst.msk [vmem:[%s1144_s3 + $0x28] sm:$0xff] %vm715_vm8, %v737_v2 }
 0x487   :  { %758 = vsyncpa [#allocation3], 1 }
 0x488   :  { %759 = vsyncpa [#allocation5], 1 }

</bundles_post_ra>
